<compile_context>
chip_gen: v7x
topology: tpu7x:2x2x1
jax: 0.10.0
libtpu: 0.0.40
codegen_flags: <defaults>
</compile_context>

<pallas_src>
from functools import partial

import jax
import jax.numpy as jnp
from jax.experimental import pallas as pl
from jax.experimental.pallas import tpu as pltpu

T = 3.0
INV_T = 1.0 / T
EPS = 1e-7


def _kl_div_row_kernel(pred_ref, label_ref, out_ref):
    """One grid step: (tile_n, C) slab -> (tile_n, 1) per-row KL partial sums."""
    p = pred_ref[...].astype(jnp.float32) * INV_T
    q = label_ref[...].astype(jnp.float32) * INV_T

    # log_softmax(pred / T) over the class (lane) axis, numerically stable.
    p_shift = p - jnp.max(p, axis=-1, keepdims=True)
    log_z = jnp.log(jnp.sum(jnp.exp(p_shift), axis=-1, keepdims=True))
    log_predict = p_shift - log_z

    # softmax(label / T) + EPS (exact module semantics), then its log.
    q_shift = q - jnp.max(q, axis=-1, keepdims=True)
    q_exp = jnp.exp(q_shift)
    inv_denom = 1.0 / jnp.sum(q_exp, axis=-1, keepdims=True)  # (tile_n, 1) only
    target = q_exp * inv_denom + EPS

    # Per-row cross-lane reduce (XLU); scalar collapse + T*T/N scale happens in JAX.
    out_ref[...] = jnp.sum(
        target * (jnp.log(target) - log_predict), axis=-1, keepdims=True
    )


def _round_up(x, m):
    return ((x + m - 1) // m) * m


def _pick_tile_rows(n, c, itemsize, max_tile_rows, vmem_budget_bytes):
    """Balanced row-tile size (multiple of 8) under a VMEM budget."""
    # Per-row pipelined VMEM: 2 inputs x 2 pipeline buffers x C x itemsize,
    # plus the lane-padded (tile_n, 128) f32 output double-buffer.
    bytes_per_row = 2 * 2 * c * itemsize + 2 * 128 * 4
    cap = max(8, (vmem_budget_bytes // bytes_per_row) // 8 * 8)
    cap = min(cap, max(8, (max_tile_rows // 8) * 8))
    if n > 8:
        # Guarantee >= 2 grid steps so the "parallel" axis can use both v7x TCs.
        cap = min(cap, max(8, _round_up(pl.cdiv(n, 2), 8)))
    # Balanced tiles: waste < 8 rows per tile instead of up to a full max tile.
    num_tiles = pl.cdiv(n, cap)
    tile_n = min(cap, _round_up(pl.cdiv(n, num_tiles), 8))
    return tile_n, bytes_per_row


@partial(jax.jit, static_argnames=("max_tile_rows", "vmem_budget_bytes"))
def kl_div_loss(pred, label, *, max_tile_rows=512, vmem_budget_bytes=None):
    """Temperature-3 KL distillation loss. pred/label: (N, C), softmax over C.

    Inputs may be float32 or bfloat16 (kernel upcasts to f32 internally).
    """
    n, c = pred.shape
    assert label.shape == (n, c)
    itemsize = jnp.dtype(pred.dtype).itemsize

    if vmem_budget_bytes is None:
        # Per-chip budget: ~21 MiB on v7x (64 MiB VMEM), ~40 MiB on v5e/v6e (128 MiB).
        try:
            vmem_cap = pltpu.get_tpu_info().vmem_capacity_bytes
        except Exception:
            vmem_cap = 64 * 1024 * 1024
        vmem_budget_bytes = int(min(40 << 20, max(16 << 20, vmem_cap // 3)))

    tile_n, bytes_per_row = _pick_tile_rows(
        n, c, itemsize, max_tile_rows, vmem_budget_bytes
    )

    # bytes_per_row already includes the x2 pipeline double-buffer factor and the
    # output buffers; add a little headroom for in-kernel f32 temporaries.
    est_vmem = tile_n * bytes_per_row + (4 << 20)
    vmem_limit = int(min(48 << 20, max(16 << 20, est_vmem)))
    if est_vmem > (48 << 20):
        # TODO(synk): for huge C (~>400K f32 classes on v7x) split the class axis
        # into a second grid dimension with online log-sum-exp accumulation.
        raise ValueError(
            f"num_classes={c} too large for single-axis full-C blocks on this chip"
        )

    grid = (pl.cdiv(n, tile_n),)  # edge block masked by Pallas; no input padding

    row_kl = pl.pallas_call(
        _kl_div_row_kernel,
        out_shape=jax.ShapeDtypeStruct((n, 1), jnp.float32),
        grid_spec=pltpu.PrefetchScalarGridSpec(
            num_scalar_prefetch=0,
            grid=grid,
            in_specs=[
                pl.BlockSpec((tile_n, c), lambda i: (i, 0)),
                pl.BlockSpec((tile_n, c), lambda i: (i, 0)),
            ],
            out_specs=pl.BlockSpec((tile_n, 1), lambda i: (i, 0)),
        ),
        compiler_params=pltpu.CompilerParams(
            dimension_semantics=("parallel",),  # disjoint per-row outputs
            vmem_limit_bytes=vmem_limit,
        ),
    )(pred, label)

    # Final reduction + scaling fused into the same jit executable.
    return (T * T) * jnp.sum(row_kl[:, 0]) / n


def _reference(pred, label):
    log_predict = jax.nn.log_softmax(pred.astype(jnp.float32) / T, axis=1)
    target = jax.nn.softmax(label.astype(jnp.float32) / T, axis=1) + EPS
    return T * T * jnp.sum(target * (jnp.log(target) - log_predict)) / pred.shape[0]


if __name__ == "__main__":
    key = jax.random.PRNGKey(0)
    k1, k2, k3, k4 = jax.random.split(key, 4)

    # Small (batch, num_classes) logits consistent with the module's forward.
    N, C = 16, 32
    pred = jax.random.normal(k1, (N, C), dtype=jnp.float32)
    label = jax.random.normal(k2, (N, C), dtype=jnp.float32)

    loss = kl_div_loss(pred, label)
    jax.block_until_ready(loss)
    ref = _reference(pred, label)
    assert jnp.allclose(loss, ref, rtol=1e-5, atol=1e-5), (loss, ref)

    # Non-divisible batch + multi-tile path: edge-block masking, no jnp.pad.
    N2, C2 = 20, 32
    pred2 = jax.random.normal(k3, (N2, C2), dtype=jnp.float32)
    label2 = jax.random.normal(k4, (N2, C2), dtype=jnp.float32)
    loss2 = kl_div_loss(pred2, label2, max_tile_rows=8)
    jax.block_until_ready(loss2)
    ref2 = _reference(pred2, label2)
    assert jnp.allclose(loss2, ref2, rtol=1e-5, atol=1e-5), (loss2, ref2)

    # bf16 inputs: exercises the itemsize-aware tile sizing; kernel upcasts to f32.
    pred3 = pred.astype(jnp.bfloat16)
    label3 = label.astype(jnp.bfloat16)
    loss3 = kl_div_loss(pred3, label3)
    jax.block_until_ready(loss3)
    ref3 = _reference(pred3, label3)
    assert jnp.allclose(loss3, ref3, rtol=1e-4, atol=1e-4), (loss3, ref3)

    print("KERNEL_OK")
</pallas_src>

<mosaic_0001>
module attributes {stable_mosaic.version = 11 : i64} {
  func.func @_kl_div_row_kernel(%arg0: i32, %arg1: memref<8x32xf32, #tpu.memory_space<vmem>>, %arg2: memref<8x32xf32, #tpu.memory_space<vmem>>, %arg3: memref<8x1xf32, #tpu.memory_space<vmem>>) attributes {dimension_semantics = [#tpu.dimension_semantics<parallel>], iteration_bounds = array<i64: 2>, scalar_prefetch = 0 : i64, scratch_operands = 0 : i64, tpu.core_type = #tpu.core_type<tc>, window_params = [{transform_indices = @transform_0, window_bounds = array<i64: 8, 32>}, {transform_indices = @transform_1, window_bounds = array<i64: 8, 32>}, {transform_indices = @transform_2, window_bounds = array<i64: 8, 1>}]} {
    %c0 = arith.constant 0 : index
    %c0_0 = arith.constant 0 : index
    %0 = vector.load %arg1[%c0, %c0_0] : memref<8x32xf32, #tpu.memory_space<vmem>>, vector<8x32xf32>
    %cst = arith.constant 0.333333343 : f32
    %1 = vector.broadcast %cst : f32 to vector<8x32xf32>
    %2 = arith.mulf %0, %1 : vector<8x32xf32>
    %c0_1 = arith.constant 0 : index
    %c0_2 = arith.constant 0 : index
    %3 = vector.load %arg2[%c0_1, %c0_2] : memref<8x32xf32, #tpu.memory_space<vmem>>, vector<8x32xf32>
    %cst_3 = arith.constant 0.333333343 : f32
    %4 = vector.broadcast %cst_3 : f32 to vector<8x32xf32>
    %5 = arith.mulf %3, %4 : vector<8x32xf32>
    %cst_4 = arith.constant dense<0xFF800000> : vector<8xf32>
    %6 = vector.multi_reduction <maximumf>, %2, %cst_4 [1] : vector<8x32xf32> to vector<8xf32>
    %7 = vector.shape_cast %6 : vector<8xf32> to vector<8x1xf32>
    %8 = vector.broadcast %7 : vector<8x1xf32> to vector<8x32xf32>
    %9 = arith.subf %2, %8 : vector<8x32xf32>
    %10 = math.exp %9 : vector<8x32xf32>
    %cst_5 = arith.constant dense<0.000000e+00> : vector<8xf32>
    %11 = vector.multi_reduction <add>, %10, %cst_5 [1] : vector<8x32xf32> to vector<8xf32>
    %12 = vector.shape_cast %11 : vector<8xf32> to vector<8x1xf32>
    %13 = math.log %12 : vector<8x1xf32>
    %14 = vector.broadcast %13 : vector<8x1xf32> to vector<8x32xf32>
    %15 = arith.subf %9, %14 : vector<8x32xf32>
    %cst_6 = arith.constant dense<0xFF800000> : vector<8xf32>
    %16 = vector.multi_reduction <maximumf>, %5, %cst_6 [1] : vector<8x32xf32> to vector<8xf32>
    %17 = vector.shape_cast %16 : vector<8xf32> to vector<8x1xf32>
    %18 = vector.broadcast %17 : vector<8x1xf32> to vector<8x32xf32>
    %19 = arith.subf %5, %18 : vector<8x32xf32>
    %20 = math.exp %19 : vector<8x32xf32>
    %cst_7 = arith.constant dense<0.000000e+00> : vector<8xf32>
    %21 = vector.multi_reduction <add>, %20, %cst_7 [1] : vector<8x32xf32> to vector<8xf32>
    %22 = vector.shape_cast %21 : vector<8xf32> to vector<8x1xf32>
    %cst_8 = arith.constant 1.000000e+00 : f32
    %23 = vector.broadcast %cst_8 : f32 to vector<8x1xf32>
    %24 = arith.divf %23, %22 : vector<8x1xf32>
    %25 = vector.broadcast %24 : vector<8x1xf32> to vector<8x32xf32>
    %26 = arith.mulf %20, %25 : vector<8x32xf32>
    %cst_9 = arith.constant 1.000000e-07 : f32
    %27 = vector.broadcast %cst_9 : f32 to vector<8x32xf32>
    %28 = arith.addf %26, %27 : vector<8x32xf32>
    %29 = math.log %28 : vector<8x32xf32>
    %30 = arith.subf %29, %15 : vector<8x32xf32>
    %31 = arith.mulf %28, %30 : vector<8x32xf32>
    %cst_10 = arith.constant dense<0.000000e+00> : vector<8xf32>
    %32 = vector.multi_reduction <add>, %31, %cst_10 [1] : vector<8x32xf32> to vector<8xf32>
    %33 = vector.shape_cast %32 : vector<8xf32> to vector<8x1xf32>
    %c0_11 = arith.constant 0 : index
    %c0_12 = arith.constant 0 : index
    %34 = vector.load %arg3[%c0_11, %c0_12] : memref<8x1xf32, #tpu.memory_space<vmem>>, vector<8x1xf32>
    tpu.vector_store %arg3[%c0_11, %c0_12], %33 {strides = array<i32>} : memref<8x1xf32, #tpu.memory_space<vmem>>, vector<8x1xf32>,
    return
  }
  func.func @transform_0(%arg0: i32) -> (i32, i32) {
    %c0_i32 = arith.constant 0 : i32
    %c0_i32_0 = arith.constant 0 : i32
    return %arg0, %c0_i32 : i32, i32
  }
  func.func @transform_1(%arg0: i32) -> (i32, i32) {
    %c0_i32 = arith.constant 0 : i32
    %c0_i32_0 = arith.constant 0 : i32
    return %arg0, %c0_i32 : i32, i32
  }
  func.func @transform_2(%arg0: i32) -> (i32, i32) {
    %c0_i32 = arith.constant 0 : i32
    %c0_i32_0 = arith.constant 0 : i32
    return %arg0, %c0_i32 : i32, i32
  }
}

</mosaic_0001>

<bundles_post_ra>
// kernel: kl_div_loss.1
= control target key start
LH: loop header
LB: loop body
LE: loop exit
PB: predicated region body
PF: predicated region fallthrough
CT: control target
= control target key end

     0   :  { %7 = vsyncpa [#allocation3], 0  ;;  %s666_s0 = inlined_call_operand.hbm [shape: f32[16,32], index: 0, kind: input, shape index: {}]   ;;  %s667_s1 = inlined_call_operand.hbm [shape: f32[16,32], index: 1, kind: input, shape index: {}]   ;;  %s668_s2 = inlined_call_operand.vmem [shape: f32[16,1], index: 2, kind: output, shape index: {}]  }
   0x1   :  { %9 = vsyncpa [#allocation3 + $0x1], 0 }
   0x2   :  { %10 = vsyncpa [#allocation5], 0 }
   0x3   :  { %12 = vsyncpa [#allocation5 + $0x1], 0  ;;  %s507_s9 = smov 0   ;;  %s509_s10 = smov 0  }
   0x4   :  { %s511_s11 = smov 0   ;;  %s513_s12 = smov 0  }
   0x5 LB: > { %s526_s13 = sadd.s32 4294967295, %s488_s12   ;;  %s529_s14 = sadd.s32 1, %s488_s12   ;;  %s488_s12 = sphi %s513_s12, %s680_s12   ;;  %s484_s11 = sphi %s511_s11, %s679_s11   ;;  %s480_s10 = sphi %s509_s10, %s678_s10   ;;  %s476_s9 = sphi %s507_s9, %s677_s9  }
   0x6   : > { %s22_s15 = ssub.s32 %s488_s12, %s529_s14  ;;  %s25_s16 = sadd.s32 1, %s484_s11 }
   0x7   : > { %p23_p0 = scmp.eq.s32.totalorder %s22_s15, 0  ;;  %p32_p1 = scmp.ne.s32.totalorder %s484_s11, %s480_s10 }
   0x8   : > { %p33_p2 = scmp.eq.s32.totalorder %s488_s12, 0  ;;  %p38_p3 = scmp.ne.s32.totalorder %s480_s10, %s476_s9 }
   0x9   : > { %s539_s17 = scalar_select %p23_p0, %s484_s11, %s25_s16  }
   0xa   : > { %p34_p4 = por %p33_p2, %p32_p1  ;;  %p39_p5 = scmp.eq.s32.totalorder %s526_s13, 0 }
   0xb   : > { %p347_p6 = scmp.lt.s32.totalorder %s488_s12, 2  ;;  %s548_s19 = sand.u32 1, %s484_s11  }
   0xc   : > { %p543_p7 = por %p39_p5, %p38_p3  ;;  %s326_s20 = sshll.u32 %s548_s19, 3 }
   0xd   : > { %s327_s21 = sshll.u32 %s488_s12, 7  ;;  %s118_s25 = scalar_lea.vmem [#allocation2], %s326_s20 }
   0xe   : > { %s670_s18 = scalar_select %p543_p7, 1, 0 }
   0xf   : > { %s557_s24 = scalar_lea.hbm %s666_s0, %s327_s21  ;;  %s125_s26 = sshll.u32 %s118_s25, 4  ;;  %s561_s26 = int_to_ptr.vmem [resolvable:$true] %s125_s26 }
  0x10   : > { %p563_p8 = pnand %p347_p6, %p34_p4  ;;  %s115_s28 = scalar_lea.sflag [#allocation3], %s548_s19 }
  0x11   : > { %s390_s29 = scalar_lea.hbm %s557_s24, 128  ;;  %s395_s4 = scalar_lea.hbm %s666_s0, 256 }
  0x12   : > { %p391_p11 = scmp.ne.s32.totalorder %s557_s24, %s390_s29  ;;  %p392_p12 = pneg %p563_p8 }
  0x13   : > { %p396_p1 = scmp.lt.u32.totalorder %s557_s24, %s666_s0  ;;  %p397_p2 = scmp.lt.u32.totalorder %s395_s4, %s390_s29 }
  0x14   : > { %p393_p13 = pnand %p392_p12, %p391_p11  ;;  %p399_p4 = scmp.lt.u32.totalorder %s390_s29, %s557_s24 }
  0x15   : > { %p398_p3 = por %p397_p2, %p396_p1 }
  0x16   : > { %p394_p0 = pneg %p393_p13 }
  0x17   : > { %p400_p5 = por %p399_p4, %p398_p3 }
  0x19   : > { %p401_p6 = pnand %p400_p5, %p394_p0 }
  0x1b   : > { %404 = shalt.err (!%p401_p6)
}
  0x1c   : > { %s405_s7 = scalar_lea.vmem %s561_s26, 128  ;;  %s490_s8 = smov [#allocation2]  }
  0x1d   : > { %p406_p11 = scmp.ne.s32.totalorder %s561_s26, %s405_s7  ;;  %s410_s9 = sshll.u32 %s490_s8, 4  ;;  %s411_s9 = int_to_ptr.vmem [resolvable:$false] %s410_s9 }
  0x1e   : > { %s412_s15 = scalar_lea.vmem %s411_s9, 256  ;;  %p413_p10 = scmp.lt.s32.totalorder %s561_s26, %s411_s9 }
  0x1f   : > { %p408_p13 = pnand %p406_p11, %p392_p12  ;;  %p414_p1 = scmp.lt.s32.totalorder %s412_s15, %s405_s7 }
  0x21   : > { %p409_p9 = pneg %p408_p13  ;;  %p415_p2 = por %p414_p1, %p413_p10 }
  0x23   : > { %p416_p3 = pnand %p415_p2, %p409_p9 }
  0x25   : > { %419 = shalt.err (!%p416_p3)
}
  0x26   : > { %343 = dma.hbm_to_vmem [thread:$0]  (!%p563_p8), %s557_s24, 128, %s561_s26, %s115_s28  }
  0x27   : > { %p672_p0 = scmp.lt.s32.totalorder %s488_s12, 3  ;;  %p673_p4 = scmp.ge.s32.totalorder %s488_s12, 1 }
  0x28   : > { %s608_s25 = scalar_lea.hbm %s667_s1, %s327_s21  ;;  %s136_s29 = scalar_lea.vmem [#allocation4], %s326_s20 }
  0x29   : > { %p599_p5 = pnand %p673_p4, %p672_p0  ;;  %s143_s30 = sshll.u32 %s136_s29, 4  ;;  %s144_s30 = int_to_ptr.vmem [resolvable:$true] %s143_s30 }
  0x2a   : > { %s133_s24 = scalar_lea.sflag [#allocation5], %s548_s19  ;;  %s420_s26 = scalar_lea.hbm %s608_s25, 128 }
  0x2b   : > { %s674_s16 = scalar_select %p599_p5, 1, 0 }
  0x2c   : > { %p421_p9 = scmp.ne.s32.totalorder %s608_s25, %s420_s26  ;;  %s425_s21 = scalar_lea.hbm %s667_s1, 256 }
  0x2d   : > { %p426_p11 = scmp.lt.u32.totalorder %s608_s25, %s667_s1  ;;  %p427_p13 = scmp.lt.u32.totalorder %s425_s21, %s420_s26 }
  0x2e   : > { %p423_p10 = pnand %p421_p9, %p392_p12  ;;  %p429_p2 = scmp.lt.u32.totalorder %s420_s26, %s608_s25 }
  0x2f   : > { %p428_p1 = por %p427_p13, %p426_p11 }
  0x30   : > { %p424_p6 = pneg %p423_p10 }
  0x31   : > { %p430_p3 = por %p429_p2, %p428_p1 }
  0x33   : > { %p431_p0 = pnand %p430_p3, %p424_p6 }
  0x35   : > { %434 = shalt.err (!%p431_p0)
}
  0x36   : > { %s435_s19 = scalar_lea.vmem %s144_s30, 128  ;;  %s491_s20 = smov [#allocation4]  }
  0x37   : > { %p436_p4 = scmp.ne.s32.totalorder %s144_s30, %s435_s19  ;;  %s440_s5 = sshll.u32 %s491_s20, 4  ;;  %s441_s5 = int_to_ptr.vmem [resolvable:$false] %s440_s5 }
  0x38   : > { %s442_s6 = scalar_lea.vmem %s441_s5, 256  ;;  %p443_p7 = scmp.lt.s32.totalorder %s144_s30, %s441_s5 }
  0x39   : > { %p438_p9 = pnand %p436_p4, %p392_p12  ;;  %p444_p5 = scmp.lt.s32.totalorder %s442_s6, %s435_s19 }
  0x3b   : > { %p439_p10 = pneg %p438_p9  ;;  %p445_p11 = por %p444_p5, %p443_p7 }
  0x3d   : > { %p446_p13 = pnand %p445_p11, %p439_p10 }
  0x3f   : > { %449 = shalt.err (!%p446_p13)
}
  0x40   : > { %346 = dma.hbm_to_vmem [thread:$0]  (!%p563_p8), %s608_s25, 128, %s144_s30, %s133_s24  }
  0x41   : > { %p675_p6 = scmp.ne.s32.totalorder %s674_s16, 0 }
  0x42   : > { %s154_s7 = sand.u32 (!%p675_p6), 1, %s480_s10   ;;  %p676_p12 = scmp.ne.s32.totalorder (!%p675_p6), %s670_s18, 0 }
  0x43   : > { %152 = sbr.rel (%p675_p6) target bundleno = 557 (0x22d), region = 28  ;;  %s331_s8 = sshll.u32 (!%p675_p6), %s154_s7, 3 }
  0x44   : > { %s155_s9 = scalar_lea.sflag (!%p675_p6), [#allocation3], %s154_s7  ;;  %s158_s15 = scalar_lea.vmem (!%p675_p6), [#allocation2], %s331_s8 }
  0x4a   : > { %467 = dma.done.wait (%p676_p12), %s155_s9, 128  }
  0x4b   : > { %469 = vsyncadd (%p676_p12), %s155_s9, 4294967168  ;;  %s164_s22 = scalar_lea.sflag [#allocation5], %s154_s7  ;;  %s167_s23 = scalar_lea.vmem [#allocation4], %s331_s8 }
  0x4c   : > { %471 = dma.done.wait (%p676_p12), %s164_s22, 128  }
  0x4d   : > { %473 = vsyncadd (%p676_p12), %s164_s22, 4294967168  ;;  %v198_v0 = vld [vmem:[%s167_s23] sm:$0xff]  ;;  %vm200_vm0 = vcmask 261120   ;;  %v196_v1 = vld [vmem:[%s158_s15] sm:$0xff]  ;;  %p192_p7 = scmp.lt.s32.totalorder %s526_s13, 1  ;;  %vm233_vm1 = vcmask 7168  }
  0x4e   : > { %v199_v2 = vmul.f32 0.33333334, %v198_v0  ;;  %v197_v3 = vmul.f32 0.33333334, %v196_v1 }
  0x4f   : > { %s682_s13 = smov (!%p192_p7, %s526_s13), 1 }
  0x50   : > { %v213_v4 = vsel %vm200_vm0, %v199_v2, -inf  ;;  %v201_v5 = vsel %vm200_vm0, %v197_v3, -inf  ;;  %s333_s18 = sshll.u32 %s682_s13, 3 }
  0x51   : > { %214 = vmax.xlane.f32.xlu0 %v213_v4  ;;  %s195_s25 = scalar_lea.vmem %s668_s2, %s333_s18 }
  0x55   : > { %202 = vmax.xlane.f32.xlu0 %v201_v5 }
  0xde   : > { %v215_v6 = vpop.xlane.xlu0 %214 }
  0xdf   : > { %v216_v7 = vsub.f32 %v199_v2, %v215_v6 }
  0xe1   : > { %v217_v8 = vmul.f32 1.442695, %v216_v7 }
  0xe2   : > { %v203_v9 = vpop.xlane.xlu0 %202 }
  0xe3   : > { %380 = vpow2.f32 %v217_v8  ;;  %v204_v10 = vsub.f32 %v197_v3, %v203_v9 }
  0xe5   : > { %v205_v11 = vmul.f32 1.442695, %v204_v10 }
  0xe7   : > { %382 = vpow2.f32 %v205_v11 }
  0xed   : > { %v381_v12 = vpop.eup %380 }
  0xee   : > { %v219_v13 = vsel %vm200_vm0, %v381_v12, 0.0 }
  0xef   : > { %220 = vadd.xlane.f32.xlu1 %v219_v13 }
  0xf1   : > { %v383_v14 = vpop.eup %382 }
  0xf2   : > { %v207_v15 = vsel %vm200_vm0, %v383_v14, 0.0 }
  0xf3   : > { %208 = vadd.xlane.f32.xlu1 %v207_v15 }
 0x17c   : > { %v221_v16 = vpop.xlane.xlu1 %220 }
 0x17d   : > { %384 = vrcp.f32 %v221_v16 }
 0x180   : > { %v209_v17 = vpop.xlane.xlu1 %208 }
 0x181   : > { %386 = vlog2.f32 %v209_v17 }
 0x187   : > { %v385_v18 = vpop.eup %384 }
 0x188   : > { %v224_v19 = vmul.f32 %v385_v18, %v381_v12 }
 0x18a   : > { %v225_v20 = vadd.f32 1e-07, %v224_v19 }
 0x18b   : > { %v387_v21 = vpop.eup %386 }
 0x18c   : > { %388 = vlog2.f32 %v225_v20  ;;  %v211_v22 = vmul.f32 0.6931472, %v387_v21 }
 0x18e   : > { %v212_v24 = vsub.f32 %v204_v10, %v211_v22 }
 0x196   : > { %v389_v23 = vpop.eup %388 }
 0x197   : > { %v227_v25 = vmul.f32 0.6931472, %v389_v23 }
 0x199   : > { %v228_v26 = vsub.f32 %v227_v25, %v212_v24 }
 0x19b   : > { %v229_v27 = vmul.f32 %v228_v26, %v225_v20 }
 0x19d   : > { %v230_v28 = vsel %vm200_vm0, %v229_v27, 0.0 }
 0x19e   : > { %231 = vadd.xlane.f32.xlu0 %v230_v28 }
 0x22b   : > { %v232_v29 = vpop.xlane.xlu0 %231 }
 0x22c   : > { %234 = vst.msk [vmem:[%s195_s25] sm:$0xff] %vm233_vm1, %v232_v29 }
 0x22d PF: > { %p15_p8 = scmp.ge.s32.totalorder %s529_s14, 4   ;;  %s677_s9 = smov %s480_s10 }
 0x22e   : > { %s678_s10 = smov %s484_s11  ;;  %s679_s11 = smov %s539_s17 }
 0x22f   : > { %s680_s12 = smov %s529_s14  ;;  %17 = sbr.rel (!%p15_p8) target bundleno = 5 (0x5), region = 81 }
 0x236   :  { %254 = vsyncpa [#allocation3], 1 }
 0x237   :  { %256 = vsyncpa [#allocation3 + $0x1], 1 }
 0x238   :  { %257 = vsyncpa [#allocation5], 1 }
 0x239   :  { %259 = vsyncpa [#allocation5 + $0x1], 1 }

</bundles_post_ra>
